<compile_context>
chip_gen: v7x
topology: tpu7x:2x2x1
jax: 0.10.0
libtpu: 0.0.40
codegen_flags: <defaults>
</compile_context>

<pallas_src>
import functools
import math

import jax
import jax.numpy as jnp
from jax.experimental import pallas as pl
from jax.experimental.pallas import tpu as pltpu

_LANE = 128
_SUBLANE = 8


def _round_up(x, m):
    return (x + m - 1) // m * m


def _pick_tile(n, target, multiple):
    """Largest tile <= target that divides n and is a multiple of `multiple`.

    Falls back to the full dimension (always a legal block shape).
    """
    t = min(target, n)
    t = (t // multiple) * multiple
    while t >= multiple:
        if n % t == 0:
            return t
        t -= multiple
    # TODO(synk): for awkward N (not a multiple of 8/128) pad N instead of
    # falling back to a full-dim block.
    return n


# --------------------------------------------------------------------------
# Kernels
# --------------------------------------------------------------------------
def _agg_then_project_kernel(adj_ref, x_ref, w_ref, b_ref, o_ref, acc_ref,
                             *, compute_dtype):
    """Path 1 (F_in <= F_out): acc += adj_tile @ x_tile; finalize acc @ w + b."""
    k = pl.program_id(2)

    @pl.when(k == 0)
    def _init():
        acc_ref[...] = jnp.zeros_like(acc_ref)

    acc_ref[...] += jnp.dot(adj_ref[...].astype(compute_dtype),
                            x_ref[...].astype(compute_dtype),
                            preferred_element_type=jnp.float32)

    @pl.when(k == pl.num_programs(2) - 1)
    def _finalize():
        out = jnp.dot(acc_ref[...].astype(compute_dtype),
                      w_ref[...].astype(compute_dtype),
                      preferred_element_type=jnp.float32)
        o_ref[...] = (out + b_ref[...]).astype(o_ref.dtype)


def _agg_support_kernel(adj_ref, s_ref, b_ref, o_ref, acc_ref, *, compute_dtype):
    """Path 2 (F_in > F_out): acc += adj_tile @ support_tile; finalize acc + b."""
    k = pl.program_id(2)

    @pl.when(k == 0)
    def _init():
        acc_ref[...] = jnp.zeros_like(acc_ref)

    acc_ref[...] += jnp.dot(adj_ref[...].astype(compute_dtype),
                            s_ref[...].astype(compute_dtype),
                            preferred_element_type=jnp.float32)

    @pl.when(k == pl.num_programs(2) - 1)
    def _finalize():
        o_ref[...] = (acc_ref[...] + b_ref[...]).astype(o_ref.dtype)


def _feature_transform_kernel(x_ref, w_ref, o_ref, *, compute_dtype):
    o_ref[...] = jnp.dot(x_ref[...].astype(compute_dtype),
                         w_ref[...].astype(compute_dtype),
                         preferred_element_type=jnp.float32).astype(o_ref.dtype)


def _feature_transform(x2d, w_pad, compute_dtype):
    """support = (B*N, F_in) @ (F_in, F_out_pad) with the batch fused into M."""
    BM, F_in = x2d.shape
    F_out_p = w_pad.shape[1]
    tm = _pick_tile(BM, 512, _SUBLANE)
    kern = functools.partial(_feature_transform_kernel, compute_dtype=compute_dtype)
    return pl.pallas_call(
        kern,
        out_shape=jax.ShapeDtypeStruct((BM, F_out_p), jnp.float32),
        grid_spec=pltpu.PrefetchScalarGridSpec(
            num_scalar_prefetch=0,
            grid=(BM // tm,),
            in_specs=[pl.BlockSpec((tm, F_in), lambda i: (i, 0)),
                      pl.BlockSpec((F_in, F_out_p), lambda i: (0, 0))],
            out_specs=pl.BlockSpec((tm, F_out_p), lambda i: (i, 0)),
        ),
        compiler_params=pltpu.CompilerParams(dimension_semantics=("parallel",)),
        cost_estimate=pl.CostEstimate(
            flops=2 * BM * F_in * F_out_p,
            transcendentals=0,
            bytes_accessed=4 * (BM * F_in + F_in * F_out_p + BM * F_out_p)),
    )(x2d, w_pad)


# --------------------------------------------------------------------------
# Wrapper
# --------------------------------------------------------------------------
def graph_convolution(x, adj, weight, bias=None, *,
                      tile_m=512, tile_k=512, compute_dtype=jnp.float32):
    """Pallas GCN forward.

    x:      (B, N, F_in)  float32
    adj:    (B, N, N)     float32 (dense adjacency per batch element)
    weight: (F_in, F_out) float32
    bias:   (1, 1, F_out) float32 or None
    returns (B, N, F_out) float32

    tile_m / tile_k: N-tiling of the aggregation matmul. Defaults (512) fit
      all generations' scoped-VMEM defaults in f32; use 128-256 on v5e and up
      to 512 on v6e/v7x.
    compute_dtype: dtype fed to the MXU operands (accumulation stays f32).
      jnp.bfloat16 enables the fast MXU path on v6e/v7x if tolerance allows.
    """
    B, N, F_in = x.shape
    F_in_w, F_out = weight.shape
    assert F_in_w == F_in
    assert adj.shape == (B, N, N)

    # Lane-dense output: pad the feature dim to a multiple of 128 so output
    # stores are unmasked full-lane vst. Padding cols are zero; sliced off.
    F_out_p = _round_up(F_out, _LANE)
    w_pad = weight if F_out_p == F_out else jnp.pad(
        weight, ((0, 0), (0, F_out_p - F_out)))
    if bias is None:
        b_pad = jnp.zeros((1, F_out_p), dtype=x.dtype)
    else:
        b_pad = bias.reshape(1, F_out)
        if F_out_p != F_out:
            b_pad = jnp.pad(b_pad, ((0, 0), (0, F_out_p - F_out)))

    tm = _pick_tile(N, tile_m, _SUBLANE)
    tk = _pick_tile(N, tile_k, _LANE)
    grid = (B, N // tm, N // tk)

    adj_spec = pl.BlockSpec((None, tm, tk), lambda b, m, k: (b, m, k))
    out_spec = pl.BlockSpec((None, tm, F_out_p), lambda b, m, k: (b, m, 0))
    w_spec = pl.BlockSpec((F_in, F_out_p), lambda b, m, k: (0, 0))
    bias_spec = pl.BlockSpec((1, F_out_p), lambda b, m, k: (0, 0))
    dim_sem = ("parallel", "parallel", "arbitrary")

    if F_in <= F_out_p:
        # (adj @ x) @ w: narrow accumulator (tm, F_in); weight applied once
        # per output tile at finalize.
        kern = functools.partial(_agg_then_project_kernel,
                                 compute_dtype=compute_dtype)
        x_spec = pl.BlockSpec((None, tk, F_in), lambda b, m, k: (b, k, 0))
        in_specs = [adj_spec, x_spec, w_spec, bias_spec]
        args = (adj, x, w_pad, b_pad)
        acc_shape = (tm, F_in)
        flops = 2 * B * N * N * F_in + 2 * B * N * F_in * F_out_p
        bytes_accessed = 4 * (adj.size + x.size + weight.size + B * N * F_out_p)
    else:
        # adj @ (x @ w): support precomputed with batch fused into the MXU M
        # axis, then aggregated with a narrower (tm, F_out_p) accumulator.
        support = _feature_transform(x.reshape(B * N, F_in), w_pad, compute_dtype)
        support = support.reshape(B, N, F_out_p)
        kern = functools.partial(_agg_support_kernel, compute_dtype=compute_dtype)
        s_spec = pl.BlockSpec((None, tk, F_out_p), lambda b, m, k: (b, k, 0))
        in_specs = [adj_spec, s_spec, bias_spec]
        args = (adj, support, b_pad)
        acc_shape = (tm, F_out_p)
        flops = 2 * B * N * N * F_out_p
        bytes_accessed = 4 * (adj.size + 2 * B * N * F_out_p)

    out_p = pl.pallas_call(
        kern,
        out_shape=jax.ShapeDtypeStruct((B, N, F_out_p), x.dtype),
        grid_spec=pltpu.PrefetchScalarGridSpec(
            num_scalar_prefetch=0,
            grid=grid,
            in_specs=in_specs,
            out_specs=out_spec,
            scratch_shapes=[pltpu.VMEM(acc_shape, jnp.float32)],
        ),
        compiler_params=pltpu.CompilerParams(dimension_semantics=dim_sem),
        cost_estimate=pl.CostEstimate(flops=flops, transcendentals=0,
                                      bytes_accessed=bytes_accessed),
    )(*args)

    return out_p if F_out_p == F_out else out_p[..., :F_out]


def init_params(key, in_features, out_features, use_bias):
    """Deterministic init matching PyTorch reset_parameters: U(-stdv, stdv)."""
    stdv = 1.0 / math.sqrt(out_features)
    k_w, k_b = jax.random.split(key)
    weight = jax.random.uniform(
        k_w, (in_features, out_features), dtype=jnp.float32,
        minval=-stdv, maxval=stdv)
    bias = None
    if use_bias:
        bias = jax.random.uniform(
            k_b, (1, 1, out_features), dtype=jnp.float32,
            minval=-stdv, maxval=stdv)
    return weight, bias


if __name__ == "__main__":
    key = jax.random.PRNGKey(0)
    B, N = 2, 16

    k_x, k_adj, k_param, k_x2 = jax.random.split(key, 4)
    adj = jax.random.uniform(k_adj, (B, N, N), dtype=jnp.float32)

    # --- Path 1: F_in < F_out (aggregate-then-project), bias=False (default).
    F_in, F_out = 8, 32
    x = jax.random.normal(k_x, (B, N, F_in), dtype=jnp.float32)
    weight, _ = init_params(k_param, F_in, F_out, use_bias=False)
    out_nb = jax.block_until_ready(graph_convolution(x, adj, weight, bias=None))
    ref_nb = jnp.matmul(adj, jnp.matmul(x, weight))
    assert out_nb.shape == (B, N, F_out)
    assert jnp.allclose(out_nb, ref_nb, atol=1e-4, rtol=1e-4)

    # --- Path 1 with bias=True.
    weight_b, bias_b = init_params(k_param, F_in, F_out, use_bias=True)
    out_b = jax.block_until_ready(graph_convolution(x, adj, weight_b, bias=bias_b))
    ref_b = jnp.matmul(adj, jnp.matmul(x, weight_b)) + bias_b
    assert out_b.shape == (B, N, F_out)
    assert jnp.allclose(out_b, ref_b, atol=1e-4, rtol=1e-4)

    # --- Path 2: F_in > F_out (batch-fused support, then aggregate), bias=True.
    F_in2, F_out2 = 160, 8
    x2 = jax.random.normal(k_x2, (B, N, F_in2), dtype=jnp.float32)
    weight2, bias2 = init_params(k_param, F_in2, F_out2, use_bias=True)
    out2 = jax.block_until_ready(graph_convolution(x2, adj, weight2, bias=bias2))
    ref2 = jnp.matmul(adj, jnp.matmul(x2, weight2)) + bias2
    assert out2.shape == (B, N, F_out2)
    assert jnp.allclose(out2, ref2, atol=1e-4, rtol=1e-4)

    print("KERNEL_OK")
</pallas_src>

<mosaic_0001>
module attributes {stable_mosaic.version = 11 : i64} {
  func.func @_agg_then_project_kernel(%arg0: i32, %arg1: i32, %arg2: i32, %arg3: memref<1x16x16xf32, #tpu.memory_space<vmem>>, %arg4: memref<1x16x8xf32, #tpu.memory_space<vmem>>, %arg5: memref<8x128xf32, #tpu.memory_space<vmem>>, %arg6: memref<1x128xf32, #tpu.memory_space<vmem>>, %arg7: memref<1x16x128xf32, #tpu.memory_space<vmem>>, %arg8: memref<16x8xf32, #tpu.memory_space<vmem>>) attributes {dimension_semantics = [#tpu.dimension_semantics<parallel>, #tpu.dimension_semantics<parallel>, #tpu.dimension_semantics<arbitrary>], iteration_bounds = array<i64: 2, 1, 1>, scalar_prefetch = 0 : i64, scratch_operands = 1 : i64, tpu.core_type = #tpu.core_type<tc>, window_params = [{transform_indices = @transform_0, window_bounds = array<i64: 1, 16, 16>}, {transform_indices = @transform_1, window_bounds = array<i64: 1, 16, 8>}, {pipeline_mode = #tpu.pipeline_mode<synchronous>, transform_indices = @transform_2, window_bounds = array<i64: 8, 128>}, {pipeline_mode = #tpu.pipeline_mode<synchronous>, transform_indices = @transform_3, window_bounds = array<i64: 1, 128>}, {transform_indices = @transform_4, window_bounds = array<i64: 1, 16, 128>}]} {
    %c0_i32 = arith.constant 0 : i32
    %0 = arith.cmpi eq, %arg2, %c0_i32 : i32
    %1 = arith.extui %0 : i1 to i32
    %c0_i32_0 = arith.constant 0 : i32
    %2 = arith.cmpi ne, %1, %c0_i32_0 : i32
    scf.if %2 {
      %cst_12 = arith.constant 0.000000e+00 : f32
      %14 = vector.broadcast %cst_12 : f32 to vector<16x8xf32>
      %c0_13 = arith.constant 0 : index
      %c0_14 = arith.constant 0 : index
      %15 = vector.load %arg8[%c0_13, %c0_14] : memref<16x8xf32, #tpu.memory_space<vmem>>, vector<16x8xf32>
      tpu.vector_store %arg8[%c0_13, %c0_14], %14 {strides = array<i32>} : memref<16x8xf32, #tpu.memory_space<vmem>>, vector<16x8xf32>,
    } else {
    }
    %c0 = arith.constant 0 : index
    %c0_1 = arith.constant 0 : index
    %3 = vector.load %arg8[%c0, %c0_1] : memref<16x8xf32, #tpu.memory_space<vmem>>, vector<16x8xf32>
    %c0_2 = arith.constant 0 : index
    %c0_3 = arith.constant 0 : index
    %c0_4 = arith.constant 0 : index
    %4 = vector.load %arg3[%c0_2, %c0_3, %c0_4] : memref<1x16x16xf32, #tpu.memory_space<vmem>>, vector<1x16x16xf32>
    %5 = vector.shape_cast %4 : vector<1x16x16xf32> to vector<16x16xf32>
    %c0_5 = arith.constant 0 : index
    %c0_6 = arith.constant 0 : index
    %c0_7 = arith.constant 0 : index
    %6 = vector.load %arg4[%c0_5, %c0_6, %c0_7] : memref<1x16x8xf32, #tpu.memory_space<vmem>>, vector<1x16x8xf32>
    %7 = vector.shape_cast %6 : vector<1x16x8xf32> to vector<16x8xf32>
    %cst = arith.constant dense<0.000000e+00> : vector<16x8xf32>
    %8 = tpu.matmul %5, %7, %cst {dimension_numbers = #tpu.dot_dimension_numbers<[1], [0], [0], [1], [0, 0, 1, 1], [], []>} : vector<16x16xf32>, vector<16x8xf32>, vector<16x8xf32> -> vector<16x8xf32>
    %9 = arith.addf %3, %8 : vector<16x8xf32>
    %c0_8 = arith.constant 0 : index
    %c0_9 = arith.constant 0 : index
    %10 = vector.load %arg8[%c0_8, %c0_9] : memref<16x8xf32, #tpu.memory_space<vmem>>, vector<16x8xf32>
    tpu.vector_store %arg8[%c0_8, %c0_9], %9 {strides = array<i32>} : memref<16x8xf32, #tpu.memory_space<vmem>>, vector<16x8xf32>,
    %c0_i32_10 = arith.constant 0 : i32
    %11 = arith.cmpi eq, %arg2, %c0_i32_10 : i32
    %12 = arith.extui %11 : i1 to i32
    %c0_i32_11 = arith.constant 0 : i32
    %13 = arith.cmpi ne, %12, %c0_i32_11 : i32
    scf.if %13 {
      %c0_12 = arith.constant 0 : index
      %c0_13 = arith.constant 0 : index
      %14 = vector.load %arg8[%c0_12, %c0_13] : memref<16x8xf32, #tpu.memory_space<vmem>>, vector<16x8xf32>
      %c0_14 = arith.constant 0 : index
      %c0_15 = arith.constant 0 : index
      %15 = vector.load %arg5[%c0_14, %c0_15] : memref<8x128xf32, #tpu.memory_space<vmem>>, vector<8x128xf32>
      %cst_16 = arith.constant dense<0.000000e+00> : vector<16x128xf32>
      %16 = tpu.matmul %14, %15, %cst_16 {dimension_numbers = #tpu.dot_dimension_numbers<[1], [0], [0], [1], [0, 0, 1, 1], [], []>} : vector<16x8xf32>, vector<8x128xf32>, vector<16x128xf32> -> vector<16x128xf32>
      %c0_17 = arith.constant 0 : index
      %c0_18 = arith.constant 0 : index
      %17 = vector.load %arg6[%c0_17, %c0_18] : memref<1x128xf32, #tpu.memory_space<vmem>>, vector<1x128xf32>
      %18 = vector.broadcast %17 : vector<1x128xf32> to vector<16x128xf32>
      %19 = arith.addf %16, %18 : vector<16x128xf32>
      %c0_19 = arith.constant 0 : index
      %c0_20 = arith.constant 0 : index
      %c0_21 = arith.constant 0 : index
      %20 = vector.load %arg7[%c0_19, %c0_20, %c0_21] : memref<1x16x128xf32, #tpu.memory_space<vmem>>, vector<1x16x128xf32>
      %21 = vector.shape_cast %20 : vector<1x16x128xf32> to vector<16x128xf32>
      %22 = vector.shape_cast %19 : vector<16x128xf32> to vector<1x16x128xf32>
      tpu.vector_store %arg7[%c0_19, %c0_20, %c0_21], %22 {strides = array<i32>} : memref<1x16x128xf32, #tpu.memory_space<vmem>>, vector<1x16x128xf32>,
    } else {
    }
    return
  }
  func.func @transform_0(%arg0: i32, %arg1: i32, %arg2: i32) -> (i32, i32, i32) {
    %c0_i32 = arith.constant 0 : i32
    return %arg0, %arg1, %arg2 : i32, i32, i32
  }
  func.func @transform_1(%arg0: i32, %arg1: i32, %arg2: i32) -> (i32, i32, i32) {
    %c0_i32 = arith.constant 0 : i32
    %c0_i32_0 = arith.constant 0 : i32
    return %arg0, %arg2, %c0_i32 : i32, i32, i32
  }
  func.func @transform_2(%arg0: i32, %arg1: i32, %arg2: i32) -> (i32, i32) {
    %c0_i32 = arith.constant 0 : i32
    %c0_i32_0 = arith.constant 0 : i32
    %c0_i32_1 = arith.constant 0 : i32
    return %c0_i32, %c0_i32_0 : i32, i32
  }
  func.func @transform_3(%arg0: i32, %arg1: i32, %arg2: i32) -> (i32, i32) {
    %c0_i32 = arith.constant 0 : i32
    %c0_i32_0 = arith.constant 0 : i32
    %c0_i32_1 = arith.constant 0 : i32
    return %c0_i32, %c0_i32_0 : i32, i32
  }
  func.func @transform_4(%arg0: i32, %arg1: i32, %arg2: i32) -> (i32, i32, i32) {
    %c0_i32 = arith.constant 0 : i32
    %c0_i32_0 = arith.constant 0 : i32
    return %arg0, %arg1, %c0_i32 : i32, i32, i32
  }
}

</mosaic_0001>

<bundles_post_ra>
// kernel: tpu_custom_call.1
= control target key start
LH: loop header
LB: loop body
LE: loop exit
PB: predicated region body
PF: predicated region fallthrough
CT: control target
= control target key end

     0   :  { %9 = vsyncpa [#allocation4], 0  ;;  %s939_s0 = inlined_call_operand.vmem [shape: f32[2,16,16], index: 0, kind: input, shape index: {}]   ;;  %s940_s1 = inlined_call_operand.vmem [shape: f32[2,16,8], index: 1, kind: input, shape index: {}]   ;;  %s941_s2 = inlined_call_operand.vmem [shape: f32[8,128], index: 2, kind: input, shape index: {}]   ;;  %s942_s3 = inlined_call_operand.vmem [shape: f32[1,128], index: 3, kind: input, shape index: {}]   ;;  %s943_s4 = inlined_call_operand.hbm [shape: f32[2,16,128], index: 4, kind: output, shape index: {}]  }
   0x1   :  { %11 = vsyncpa [#allocation4 + $0x1], 0  ;;  %s809_s15 = smov 0   ;;  %s811_s16 = smov 0  }
   0x2   :  { %s813_s17 = smov 0   ;;  %s815_s18 = smov 0  }
   0x3   :  { %s817_s19 = smov 0   ;;  %s819_s20 = smov 0  }
   0x4 LB: > { %s596_s21 = sadd.s32 4294967295, %s778_s20   ;;  %s597_s22 = sadd.s32 4294967294, %s778_s20   ;;  %s778_s20 = sphi %s819_s20, %s17_s20   ;;  %s774_s19 = sphi %s817_s19, %s950_s19   ;;  %s770_s18 = sphi %s815_s18, %s949_s18   ;;  %s766_s17 = sphi %s813_s17, %s948_s17   ;;  %s762_s16 = sphi %s811_s16, %s947_s16   ;;  %s758_s15 = sphi %s809_s15, %s946_s15  }
   0x5   : > { %s36_s23 = sadd.s32 1, %s774_s19  ;;  %s145_s24 = sadd.s32 1, %s766_s17 }
   0x6   : > { %p38_p0 = scmp.ge.s32.totalorder %s36_s23, 2  ;;  %p155_p1 = scmp.ne.s32.totalorder %s766_s17, %s762_s16 }
   0x7   : > { %p156_p2 = scmp.eq.s32.totalorder %s596_s21, 1  ;;  %p161_p3 = scmp.ne.s32.totalorder %s762_s16, %s758_s15 }
   0x8   : > { %s952_s23 = smov (%p38_p0, %s36_s23), 0  ;;  %p162_p5 = scmp.eq.s32.totalorder %s597_s22, 1 }
   0x9   : > { %p849_p4 = por %p156_p2, %p155_p1  ;;  %s140_s26 = ssub.s32 %s774_s19, %s952_s23 }
   0xa   : > { %p600_p6 = scmp.ge.s32.totalorder %s778_s20, 1  ;;  %p143_p7 = scmp.eq.s32.totalorder %s140_s26, 0 }
   0xb   : > { %p856_p8 = por %p162_p5, %p161_p3  ;;  %p215_p9 = scmp.lt.s32.totalorder %s778_s20, 3 }
   0xc   : > { %s862_s28 = scalar_select %p143_p7, %s766_s17, %s145_s24  }
   0xd   : > { %p216_p10 = pnand %p600_p6, %p215_p9 }
   0xe   : > { %p258_p11 = scmp.lt.s32.totalorder (!%p216_p10), %s770_s18, 1  ;;  %vm285_vm0 = vcmask (!%p216_p10), 64512   ;;  %v780_v0 = vmov (!%p216_p10), 0.0   ;;  %vm294_vm1 = vcmask (!%p216_p10), 130048   ;;  %v386_v6 = vld [vmem:[%s941_s2] sm:$0xff] (!%p216_p10)  ;;  %s254_s13 = sand.u32 (!%p216_p10), 1, %s762_s16  }
   0xf   : > { %219 = sbr.rel (%p216_p10) target bundleno = 487 (0x1e7), region = 36  ;;  %287 = vst.msk [vmem:[#allocation2 + $0x8] sm:$0xff] (!%p216_p10), %vm285_vm0, %v780_v0  ;;  %286 = vst.msk [vmem:[#allocation2] sm:$0xff] (!%p216_p10), %vm285_vm0, %v780_v0  ;;  %633 = vmatprep.subr.mxu1 (!%p216_p10), %v386_v6  ;;  %s601_s14 = sshll.u32 (!%p216_p10), %s254_s13, 4  ;;  %v608_v15 = vld [vmem:[%s942_s3] ss:$0 sm:$0xff] (!%p216_p10) }
  0x10   : > { %634 = vmatpush3.msra.mxu1 (!%p216_p10), %v386_v6  ;;  %s256_s24 = scalar_lea.vmem (!%p216_p10), [#allocation3], %s601_s14 }
  0x11   : > { %s493_s26 = sshll.u32 (!%p216_p10), %s256_s24, 4  ;;  %s886_s26 = int_to_ptr.vmem [resolvable:$true] %s493_s26 }
  0x12   : > { %s700_s8 = scalar_lea.vmem (!%p216_p10), %s886_s26, 256 }
  0x13   : > { %p701_p12 = scmp.ne.s32.totalorder (!%p216_p10), %s886_s26, %s700_s8 }
  0x15   : > { %p702_p13 = pnand (!%p216_p10), %p701_p12, %p849_p4 }
  0x16   : > { %s259_s29 = scalar_select %p258_p11, %s770_s18, 1  ;;  %v289_v7 = vld [vmem:[#allocation2 + $0x8] sm:$0xff]  ;;  %v288_v8 = vld [vmem:[#allocation2] sm:$0xff] }
  0x17   : > { %p703_p0 = pneg %p702_p13 }
  0x18   : > { %s616_s30 = sshll.u32 %s259_s29, 4  ;;  %s618_s29 = sshll.u32 %s770_s18, 8 }
  0x19   : > { %s278_s7 = scalar_lea.vmem %s940_s1, %s616_s30  ;;  %s268_s10 = scalar_lea.vmem %s939_s0, %s616_s30 }
  0x1a   : > { %v292_v1 = vld [vmem:[%s278_s7] sm:$0xff]  ;;  %v293_v2 = vld [vmem:[%s278_s7 + $0x8] sm:$0xff]  ;;  %s891_s6 = scalar_lea.hbm %s943_s4, %s618_s29  ;;  %s893_s7 = scalar_lea.sflag [#allocation4], %s254_s13 }
  0x1b   : > { %v290_v3 = vld [vmem:[%s268_s10] sm:$0xff]  ;;  %v638_v4 = vpack.c.bf16 %v293_v2, %v292_v1  ;;  %v291_v5 = vld [vmem:[%s268_s10 + $0x8] sm:$0xff]  ;;  %s781_s18 = smov [#allocation3]  }
  0x1c   : > { %630 = vmatprep.mubr.msk.f32.mxu0 %vm294_vm1, %v290_v3  ;;  %s704_s9 = sshll.u32 %s781_s18, 4  ;;  %s705_s9 = int_to_ptr.vmem [resolvable:$false] %s704_s9 }
  0x1d   : > { %639 = vmatprep.subr.bf16.mxu0 %v638_v4  ;;  %s706_s10 = scalar_lea.vmem %s705_s9, 512  ;;  %p707_p1 = scmp.lt.s32.totalorder %s886_s26, %s705_s9 }
  0x1e   : > { %641 = vmatpush3.bf16.msra.mxu0 %v638_v4  ;;  %p708_p2 = scmp.lt.s32.totalorder %s706_s10, %s700_s8 }
  0x20   : > { %p709_p3 = por %p708_p2, %p707_p1 }
  0x21   : > { %631 = vmatmul.mubr.msk.f32.vlgmr.msra.gmra.mrb[0].mxu0 %vm294_vm1, %v291_v5 }
  0x22   : > { %p710_p5 = pnand %p709_p3, %p703_p0 }
  0xf4   : > { %v632_v9 = vpop.f32.mrb[0].mxu0 }
  0xf5   : > { %v377_v10 = vadd.f32 %v632_v9, %v289_v7  ;;  %v367_v11 = vpop.f32.mrb[1].mxu0 }
  0xf6   : > { %v376_v12 = vadd.f32 %v367_v11, %v288_v8 }
  0xf7   : > { %380 = vst.msk [vmem:[#allocation2 + $0x8] sm:$0xff] %vm285_vm0, %v377_v10 }
  0xf8   : > { %379 = vst.msk [vmem:[#allocation2] sm:$0xff] %vm285_vm0, %v376_v12 }
  0xfe   : > { %v385_v14 = vld [vmem:[#allocation2 + $0x8] sm:$0xff] }
  0xff   : > { %v384_v13 = vld [vmem:[#allocation2] sm:$0xff] }
 0x100   : > { %635 = vmatprep.mubr.msk.f32.mxu1 %vm285_vm0, %v384_v13 }
 0x101   : > { %636 = vmatmul.mubr.msk.f32.vlgmr.msra.gmra.mrb[0].mxu1 %vm285_vm0, %v385_v14 }
 0x1d4   : > { %v637_v16 = vpop.f32.mrb[0].mxu1 }
 0x1d5   : > { %v472_v17 = vadd.f32 %v637_v16, %v608_v15  ;;  %v466_v18 = vpop.f32.mrb[1].mxu1 }
 0x1d6   : > { %v467_v19 = vadd.f32 %v608_v15, %v466_v18 }
 0x1d7   : > { %476 = vst [vmem:[%s256_s24 + $0x8] sm:$0xff] %v472_v17 }
 0x1d8   : > { %475 = vst [vmem:[%s256_s24] sm:$0xff] %v467_v19 }
 0x1d9   : > { %713 = shalt.err (!%p710_p5)
}
 0x1da   : > { %s714_s11 = scalar_lea.hbm %s891_s6, 256  ;;  %s718_s14 = scalar_lea.hbm %s943_s4, 512 }
 0x1db   : > { %p715_p6 = scmp.ne.s32.totalorder %s891_s6, %s714_s11  ;;  %p719_p10 = scmp.lt.u32.totalorder %s891_s6, %s943_s4 }
 0x1dc   : > { %p720_p11 = scmp.lt.u32.totalorder %s718_s14, %s714_s11  ;;  %p722_p13 = scmp.lt.u32.totalorder %s714_s11, %s891_s6 }
 0x1dd   : > { %p716_p7 = pnand %p715_p6, %p849_p4 }
 0x1de   : > { %p721_p12 = por %p720_p11, %p719_p10 }
 0x1df   : > { %p717_p9 = pneg %p716_p7 }
 0x1e0   : > { %p723_p0 = por %p722_p13, %p721_p12 }
 0x1e2   : > { %p724_p1 = pnand %p723_p0, %p717_p9 }
 0x1e4   : > { %727 = shalt.err (!%p724_p1)
}
 0x1e5   : > { %s782_s24 = smov 128   ;;  %s783_s29 = smov 8  }
 0x1e6   : > { %642 = dma.vmem_to_hbm [thread:$0]  (%p849_p4), %s886_s26, 256, %s891_s6, %s893_s7, %s782_s24, %s782_s24, %s783_s29  }
 0x1e7 PF: > { %p648_p2 = scmp.ge.s32.totalorder %s778_s20, 2  ;;  %s508_s30 = sand.u32 1, %s758_s15  }
 0x1e8   : > { %s509_s5 = scalar_lea.sflag [#allocation4], %s508_s30 }
 0x1e9   : > { %p645_p3 = pnand %p648_p2, %p856_p8 }
 0x1eb   : > { %753 = dma.done.wait (!%p645_p3), %s509_s5, 256  }
 0x1ec   : > { %755 = vsyncadd (!%p645_p3), %s509_s5, 4294967040  ;;  %s17_s20 = sadd.s32 1, %s778_s20   ;;  %s946_s15 = smov %s762_s16 }
 0x1ed   : > { %p14_p5 = scmp.ge.s32.totalorder %s17_s20, 4   ;;  %s947_s16 = smov %s766_s17 }
 0x1ee   : > { %s948_s17 = smov %s862_s28  ;;  %s949_s18 = smov %s774_s19 }
 0x1ef   : > { %s950_s19 = smov %s952_s23  ;;  %16 = sbr.rel (!%p14_p5) target bundleno = 4 (0x4), region = 82 }
 0x1f6   :  { %514 = vsyncpa [#allocation4], 1 }
 0x1f7   :  { %516 = vsyncpa [#allocation4 + $0x1], 1 }

</bundles_post_ra>
